<compile_context>
chip_gen: v7x
topology: tpu7x:2x2x1
jax: 0.10.0
libtpu: 0.0.40
codegen_flags: <defaults>
</compile_context>

<pallas_src>
import jax
import jax.numpy as jnp
from jax.experimental import pallas as pl
from jax.experimental.pallas import tpu as pltpu

INPUT_DIM = 4
HIDDEN_DIM = 16
OUTPUT_DIM = 3


def simplenet_kernel(x_ref, w1_ref, b1_ref, w2_ref, b2_ref, o_ref):
    # x_ref:  (INPUT_DIM, TB)          VMEM, batch on the lane axis.
    # w1_ref: (HIDDEN_DIM, INPUT_DIM)  VMEM resident   b1_ref: (HIDDEN_DIM, 1)
    # w2_ref: (OUTPUT_DIM, HIDDEN_DIM) VMEM resident   b2_ref: (OUTPUT_DIM, 1)
    # o_ref:  (OUTPUT_DIM, TB)         VMEM
    x = x_ref[...]

    # fc1 + ReLU on the MXU, bias/ReLU as a full-occupancy (16, TB) VPU op.
    h = jnp.dot(w1_ref[...], x, preferred_element_type=jnp.float32)
    h = jnp.maximum(h + b1_ref[...], 0.0)

    # fc2 on the MXU; single lane-dense (OUTPUT_DIM, TB) store.
    y = jnp.dot(w2_ref[...], h, preferred_element_type=jnp.float32) + b2_ref[...]
    o_ref[...] = y.astype(o_ref.dtype)


def _round_up(n, m):
    return ((n + m - 1) // m) * m


def _pick_tile(batch, tb_max):
    """Lane-dense batch tile: multiple of 128, <= tb_max, >= 2 grid steps
    when the batch spans >= 2 lane tiles (feeds both v7x TensorCores)."""
    b128 = _round_up(batch, 128)
    tb = min(tb_max, b128)
    if b128 >= 256:
        tb = min(tb, _round_up(-(-b128 // 2), 128))
    return _round_up(tb, 128)


def simplenet_forward(x, w1, b1, w2, b2, *, tb=65536):
    """x: (B, INPUT_DIM) f32 -> (B, OUTPUT_DIM) f32. Torch-layout params."""
    B = x.shape[0]
    assert x.shape[1] == INPUT_DIM

    tb = _pick_tile(B, tb)
    b_pad = _round_up(B, tb)

    # Feature-major, lane-dense x: (INPUT_DIM, B_pad); tail-only padding.
    x_t = x.T
    pad = b_pad - B
    if pad:
        x_t = jnp.pad(x_t, ((0, 0), (0, pad)))

    # Biases as (N, 1) columns so they broadcast along the lane axis in VMEM.
    b1c = b1.reshape(HIDDEN_DIM, 1)
    b2c = b2.reshape(OUTPUT_DIM, 1)

    flops = 2 * b_pad * (INPUT_DIM * HIDDEN_DIM + HIDDEN_DIM * OUTPUT_DIM)
    bytes_accessed = int(
        (x_t.size + OUTPUT_DIM * b_pad + w1.size + b1.size + w2.size + b2.size) * 4
    )

    out_t = pl.pallas_call(
        simplenet_kernel,
        out_shape=jax.ShapeDtypeStruct((OUTPUT_DIM, b_pad), jnp.float32),
        grid=(b_pad // tb,),
        in_specs=[
            pl.BlockSpec((INPUT_DIM, tb), lambda i: (0, i)),            # x stream
            pl.BlockSpec((HIDDEN_DIM, INPUT_DIM), lambda i: (0, 0)),    # w1 resident
            pl.BlockSpec((HIDDEN_DIM, 1), lambda i: (0, 0)),            # b1 resident
            pl.BlockSpec((OUTPUT_DIM, HIDDEN_DIM), lambda i: (0, 0)),   # w2 resident
            pl.BlockSpec((OUTPUT_DIM, 1), lambda i: (0, 0)),            # b2 resident
        ],
        out_specs=pl.BlockSpec((OUTPUT_DIM, tb), lambda i: (0, i)),
        compiler_params=pltpu.CompilerParams(
            dimension_semantics=("parallel",),
        ),
        cost_estimate=pl.CostEstimate(
            flops=flops, transcendentals=0, bytes_accessed=bytes_accessed
        ),
    )(x_t, w1, b1c, w2, b2c)

    # Drop padded batch columns, back to (B, OUTPUT_DIM).
    return out_t[:, :B].T


def init_params(key):
    """Deterministic init mimicking nn.Linear default (U[-1/sqrt(fan_in), +]).

    Weights in torch layout [out, in]; biases 1-D.
    """
    k1, k2, k3, k4 = jax.random.split(key, 4)
    lim1 = 1.0 / jnp.sqrt(float(INPUT_DIM))
    lim2 = 1.0 / jnp.sqrt(float(HIDDEN_DIM))
    w1 = jax.random.uniform(k1, (HIDDEN_DIM, INPUT_DIM), jnp.float32, -lim1, lim1)
    b1 = jax.random.uniform(k2, (HIDDEN_DIM,), jnp.float32, -lim1, lim1)
    w2 = jax.random.uniform(k3, (OUTPUT_DIM, HIDDEN_DIM), jnp.float32, -lim2, lim2)
    b2 = jax.random.uniform(k4, (OUTPUT_DIM,), jnp.float32, -lim2, lim2)
    return w1, b1, w2, b2


if __name__ == "__main__":
    key = jax.random.PRNGKey(0)
    kx, kp, kx2 = jax.random.split(key, 3)

    w1, b1, w2, b2 = init_params(kp)

    def ref_forward(xx):
        # Same math as torch: relu(x @ W1.T + b1) @ W2.T + b2
        h = jnp.maximum(xx @ w1.T + b1, 0.0)
        return h @ w2.T + b2

    # Small batch (single grid step, batch padded to one 128-lane tile).
    B = 8
    x = jax.random.normal(kx, (B, INPUT_DIM), jnp.float32)
    out = jax.block_until_ready(simplenet_forward(x, w1, b1, w2, b2))
    assert out.shape == (B, OUTPUT_DIM)
    assert jnp.allclose(out, ref_forward(x), atol=1e-5, rtol=1e-5)

    # Ragged batch with multiple grid steps (exercises padding + pipelining
    # + the >=2-block megacore split).
    B2 = 300
    x2 = jax.random.normal(kx2, (B2, INPUT_DIM), jnp.float32)
    out2 = jax.block_until_ready(simplenet_forward(x2, w1, b1, w2, b2))
    assert out2.shape == (B2, OUTPUT_DIM)
    assert jnp.allclose(out2, ref_forward(x2), atol=1e-5, rtol=1e-5)

    print("KERNEL_OK")
</pallas_src>

<mosaic_0001>
module attributes {stable_mosaic.version = 11 : i64} {
  func.func @simplenet_kernel(%arg0: i32, %arg1: memref<4x128xf32, #tpu.memory_space<vmem>>, %arg2: memref<16x4xf32, #tpu.memory_space<vmem>>, %arg3: memref<16x1xf32, #tpu.memory_space<vmem>>, %arg4: memref<3x16xf32, #tpu.memory_space<vmem>>, %arg5: memref<3x1xf32, #tpu.memory_space<vmem>>, %arg6: memref<3x128xf32, #tpu.memory_space<vmem>>) attributes {dimension_semantics = [#tpu.dimension_semantics<parallel>], iteration_bounds = array<i64: 1>, scalar_prefetch = 0 : i64, scratch_operands = 0 : i64, tpu.core_type = #tpu.core_type<tc>, window_params = [{transform_indices = @transform_0, window_bounds = array<i64: 4, 128>}, {pipeline_mode = #tpu.pipeline_mode<synchronous>, transform_indices = @transform_1, window_bounds = array<i64: 16, 4>}, {pipeline_mode = #tpu.pipeline_mode<synchronous>, transform_indices = @transform_2, window_bounds = array<i64: 16, 1>}, {pipeline_mode = #tpu.pipeline_mode<synchronous>, transform_indices = @transform_3, window_bounds = array<i64: 3, 16>}, {pipeline_mode = #tpu.pipeline_mode<synchronous>, transform_indices = @transform_4, window_bounds = array<i64: 3, 1>}, {transform_indices = @transform_5, window_bounds = array<i64: 3, 128>}]} {
    %c0 = arith.constant 0 : index
    %c0_0 = arith.constant 0 : index
    %0 = vector.load %arg1[%c0, %c0_0] : memref<4x128xf32, #tpu.memory_space<vmem>>, vector<4x128xf32>
    %c0_1 = arith.constant 0 : index
    %c0_2 = arith.constant 0 : index
    %1 = vector.load %arg2[%c0_1, %c0_2] : memref<16x4xf32, #tpu.memory_space<vmem>>, vector<16x4xf32>
    %cst = arith.constant dense<0.000000e+00> : vector<16x128xf32>
    %2 = tpu.matmul %1, %0, %cst {dimension_numbers = #tpu.dot_dimension_numbers<[1], [0], [0], [1], [0, 0, 1, 1], [], []>} : vector<16x4xf32>, vector<4x128xf32>, vector<16x128xf32> -> vector<16x128xf32>
    %c0_3 = arith.constant 0 : index
    %c0_4 = arith.constant 0 : index
    %3 = vector.load %arg3[%c0_3, %c0_4] : memref<16x1xf32, #tpu.memory_space<vmem>>, vector<16x1xf32>
    %4 = vector.broadcast %3 : vector<16x1xf32> to vector<16x128xf32>
    %5 = arith.addf %2, %4 : vector<16x128xf32>
    %cst_5 = arith.constant 0.000000e+00 : f32
    %6 = vector.broadcast %cst_5 : f32 to vector<16x128xf32>
    %7 = arith.maximumf %5, %6 : vector<16x128xf32>
    %c0_6 = arith.constant 0 : index
    %c0_7 = arith.constant 0 : index
    %8 = vector.load %arg4[%c0_6, %c0_7] : memref<3x16xf32, #tpu.memory_space<vmem>>, vector<3x16xf32>
    %cst_8 = arith.constant dense<0.000000e+00> : vector<3x128xf32>
    %9 = tpu.matmul %8, %7, %cst_8 {dimension_numbers = #tpu.dot_dimension_numbers<[1], [0], [0], [1], [0, 0, 1, 1], [], []>} : vector<3x16xf32>, vector<16x128xf32>, vector<3x128xf32> -> vector<3x128xf32>
    %c0_9 = arith.constant 0 : index
    %c0_10 = arith.constant 0 : index
    %10 = vector.load %arg5[%c0_9, %c0_10] : memref<3x1xf32, #tpu.memory_space<vmem>>, vector<3x1xf32>
    %11 = vector.broadcast %10 : vector<3x1xf32> to vector<3x128xf32>
    %12 = arith.addf %9, %11 : vector<3x128xf32>
    %c0_11 = arith.constant 0 : index
    %c0_12 = arith.constant 0 : index
    %13 = vector.load %arg6[%c0_11, %c0_12] : memref<3x128xf32, #tpu.memory_space<vmem>>, vector<3x128xf32>
    tpu.vector_store %arg6[%c0_11, %c0_12], %12 {strides = array<i32>} : memref<3x128xf32, #tpu.memory_space<vmem>>, vector<3x128xf32>,
    return
  }
  func.func @transform_0(%arg0: i32) -> (i32, i32) {
    %c0_i32 = arith.constant 0 : i32
    %c0_i32_0 = arith.constant 0 : i32
    return %c0_i32, %arg0 : i32, i32
  }
  func.func @transform_1(%arg0: i32) -> (i32, i32) {
    %c0_i32 = arith.constant 0 : i32
    %c0_i32_0 = arith.constant 0 : i32
    %c0_i32_1 = arith.constant 0 : i32
    return %c0_i32, %c0_i32_0 : i32, i32
  }
  func.func @transform_2(%arg0: i32) -> (i32, i32) {
    %c0_i32 = arith.constant 0 : i32
    %c0_i32_0 = arith.constant 0 : i32
    %c0_i32_1 = arith.constant 0 : i32
    return %c0_i32, %c0_i32_0 : i32, i32
  }
  func.func @transform_3(%arg0: i32) -> (i32, i32) {
    %c0_i32 = arith.constant 0 : i32
    %c0_i32_0 = arith.constant 0 : i32
    %c0_i32_1 = arith.constant 0 : i32
    return %c0_i32, %c0_i32_0 : i32, i32
  }
  func.func @transform_4(%arg0: i32) -> (i32, i32) {
    %c0_i32 = arith.constant 0 : i32
    %c0_i32_0 = arith.constant 0 : i32
    %c0_i32_1 = arith.constant 0 : i32
    return %c0_i32, %c0_i32_0 : i32, i32
  }
  func.func @transform_5(%arg0: i32) -> (i32, i32) {
    %c0_i32 = arith.constant 0 : i32
    %c0_i32_0 = arith.constant 0 : i32
    return %c0_i32, %arg0 : i32, i32
  }
}

</mosaic_0001>

<bundles_post_ra>
// kernel: tpu_custom_call.1
= control target key start
LH: loop header
LB: loop body
LE: loop exit
PB: predicated region body
PF: predicated region fallthrough
CT: control target
= control target key end

     0   :  { %vm43_vm0 = vcmask 1043456   ;;  %vm36_vm1 = vcmask 31744   ;;  %s344_s0 = inlined_call_operand.vmem [shape: f32[4,128], index: 0, kind: input, shape index: {}]   ;;  %s345_s1 = inlined_call_operand.vmem [shape: f32[16,4], index: 1, kind: input, shape index: {}]   ;;  %s346_s2 = inlined_call_operand.vmem [shape: f32[16,1], index: 2, kind: input, shape index: {}]   ;;  %s347_s3 = inlined_call_operand.vmem [shape: f32[3,16], index: 3, kind: input, shape index: {}]   ;;  %s348_s4 = inlined_call_operand.vmem [shape: f32[3,1], index: 4, kind: input, shape index: {}]   ;;  %s349_s5 = inlined_call_operand.hbm [shape: f32[3,128], index: 5, kind: output, shape index: {}]  }
   0x1   :  { %v21_v0 = vld [vmem:[%s344_s0] sm:$0xf]  ;;  %v23_v2 = vld [vmem:[%s345_s1 + $0x8] sm:$0xff] }
   0x2   :  { %v22_v1 = vld [vmem:[%s345_s1] sm:$0xff]  ;;  %230 = vmatprep.subr.msk.mxu0 %vm43_vm0, %v21_v0 }
   0x3   :  { %232 = vmatprep.mubr.msk.f32.mxu0 %vm36_vm1, %v22_v1  ;;  %v24_v3 = vld [vmem:[%s346_s2] sm:$0xff] }
   0x4   :  { %10 = vsyncpa [#allocation3], 0  ;;  %231 = vmatpush3.msk.msra.mxu0 %vm43_vm0, %v21_v0  ;;  %v276_v4 = vmov 0   ;;  %v25_v5 = vld [vmem:[%s346_s2 + $0x8] sm:$0xff]  ;;  %v277_v6 = vmov 0.0|0.0   ;;  %vm278_vm2 = vmmov 0  }
   0x5   :  { %250 = vset.pattern.permute.xlu0 %v276_v4  ;;  %233 = vmatmul.mubr.msk.f32.vlgmr.msra.gmra.mrb[0].mxu0 %vm36_vm1, %v23_v2  ;;  %v279_v7 = vmov 0.0   ;;  %v125_v8 = vld [vmem:[%s348_s4] sm:$0x7]  ;;  %vm131_vm3 = vcmask 130048   ;;  %s280_s29 = smov [#allocation2]  }
   0x6   :  { %28 = vperm.xlu0 %250, %v24_v3   ;;  %251 = vset.pattern.permute.xlu1 %v276_v4  ;;  %v124_v18 = vld [vmem:[%s347_s3] sm:$0x7]  ;;  %s212_s4 = sshll.u32 %s280_s29, 4  ;;  %s213_s4 = int_to_ptr.vmem [resolvable:$true] %s212_s4 }
   0x7   :  { %242 = vmatprep.subr.bf16.mxu1 %v277_v6  ;;  %239 = vmatprep.mubr.msk.f32.mxu1 %vm278_vm2, %v279_v7  ;;  %s252_s30 = scalar_lea.vmem %s213_s4, 64  ;;  %p257_p1 = scmp.lt.s32.totalorder %s213_s4, %s213_s4 }
   0x8   :  { %128 = vperm.xlu1 %251, %v125_v8   ;;  %p253_p0 = scmp.ne.s32.totalorder %s213_s4, %s252_s30  ;;  %p258_p2 = scmp.lt.s32.totalorder %s252_s30, %s252_s30 }
   0xa   :  { %33 = vperm.xlu0 %250, %v25_v5   ;;  %p259_p3 = por %p258_p2, %p257_p1 }
   0xc   :  { %p260_p4 = pnand %p259_p3, %p253_p0 }
  0x85   :  { %v29_v9 = vpop.permute.xlu0 %28 }
  0x87   :  { %v129_v19 = vpop.permute.xlu1 %128 }
  0x89   :  { %v34_v10 = vpop.permute.xlu0 %33 }
  0xd8   :  { %v234_v11 = vpop.f32.mrb[0].mxu0 }
  0xd9   :  { %v119_v12 = vadd.f32 %v234_v11, %v34_v10  ;;  %v113_v13 = vpop.f32.mrb[1].mxu0 }
  0xda   :  { %v114_v14 = vadd.f32 %v113_v13, %v29_v9 }
  0xdb   :  { %v123_v15 = vmax.f32 %v119_v12, 0.0 }
  0xdc   :  { %v122_v16 = vmax.f32 %v114_v14, 0.0 }
  0xde   :  { %v243_v17 = vpack.c.bf16 %v123_v15, %v122_v16 }
  0xe0   :  { %244 = vmatpush3.bf16.msra.mxu1 %v243_v17 }
  0xe3   :  { %240 = vmatmul.mubr.msk.f32.vlgmr.msra.gmra.mrb[0].mxu1 %vm131_vm3, %v124_v18 }
 0x1b6   :  { %v201_v20 = vpop.f32.mrb[0].mxu1 }
 0x1b7   :  { %v202_v21 = vadd.f32 %v201_v20, %v129_v19  ;;  %v241_v22 = vpop.f32.mrb[1].mxu1 }
 0x1b9   :  { %205 = vst [vmem:[#allocation2] sm:$0x7] %v202_v21 }
 0x1ba   :  { %263 = shalt.err (!%p260_p4)
}
 0x1bb   :  { %s264_s3 = scalar_lea.hbm %s349_s5, 64 }
 0x1bc   :  { %p265_p5 = scmp.ne.s32.totalorder %s349_s5, %s264_s3  ;;  %p268_p6 = scmp.lt.u32.totalorder %s264_s3, %s349_s5 }
 0x1be   :  { %p270_p7 = pnand %p268_p6, %p265_p5 }
 0x1c0   :  { %273 = shalt.err (!%p270_p7)
}
 0x1c1   :  { %215 = dma.vmem_to_hbm [thread:$0]  %s213_s4, 64, %s349_s5, [#allocation3]  }
 0x1c2   :  { %274 = dma.done.wait [#allocation3], 64  }
 0x1c3   :  { %275 = vsyncadd [#allocation3], 4294967232 }
 0x1c4   :  { %219 = vsyncpa [#allocation3], 1 }

</bundles_post_ra>
